<compile_context>
chip_gen: v6e
topology: v6e:2x2x1
jax: 0.10.0
libtpu: 0.0.40
codegen_flags: <defaults>
</compile_context>

<pallas_src>
import functools

import jax
import jax.numpy as jnp
from jax.experimental import pallas as pl
from jax.experimental.pallas import tpu as pltpu


def _focal_loss_kernel(x_ref, t_ref, a_ref, o_ref, *, gamma, n_rows, tile_n):
    # x_ref: (tile_n, C) logits (native dtype), t_ref: (tile_n, 1) int32 targets,
    # a_ref: (1, C) per-class alpha, o_ref: (1, 1) SMEM partial-sum output.
    pid = pl.program_id(0)

    x = x_ref[...].astype(jnp.float32)           # (tile_n, C)
    t = t_ref[...]                               # (tile_n, 1) int32
    alpha = a_ref[...].astype(jnp.float32)       # (1, C)

    tn, c = x.shape

    # Valid-row mask for a possibly-partial last tile; also sanitize masked
    # rows so exp/log stay finite (OOB block contents are unspecified).
    row = jax.lax.broadcasted_iota(jnp.int32, (tn, 1), 0) + pid * tile_n
    row_ok = row < n_rows                        # (tile_n, 1) bool
    x = jnp.where(row_ok, x, 0.0)
    t = jnp.where(row_ok, t, 0)

    # One-hot class mask via iota compare (scatter_ equivalent).
    ids = jax.lax.broadcasted_iota(jnp.int32, (tn, c), 1)
    class_mask = (ids == t).astype(jnp.float32)  # (tile_n, C)

    # Target probability via max / sum-exp at the target logit only; the full
    # softmax matrix is never formed.
    m = jnp.max(x, axis=1, keepdims=True)                        # (tile_n, 1)
    sumexp = jnp.sum(jnp.exp(x - m), axis=1, keepdims=True)      # (tile_n, 1)
    x_t = jnp.sum(x * class_mask, axis=1, keepdims=True)         # target logit
    probs = jnp.exp(x_t - m) / sumexp                            # (tile_n, 1)
    probs = jnp.clip(probs, 0.0001, 1.0)                         # match reference clamp
    log_p = jnp.log(probs)

    # alpha[target] gathered via the same one-hot mask.
    alpha_sel = jnp.sum(class_mask * alpha, axis=1, keepdims=True)

    # (1 - p)^gamma: repeated multiply for small integer gamma (VPU only),
    # jnp.power fallback otherwise.
    one_minus = 1.0 - probs
    g = float(gamma)
    if g == 2.0:
        focal = one_minus * one_minus
    elif g.is_integer() and 0.0 <= g <= 4.0:
        focal = jnp.ones_like(one_minus)
        for _ in range(int(g)):
            focal = focal * one_minus
    else:
        focal = jnp.power(one_minus, jnp.float32(g))

    valid_f = row_ok.astype(jnp.float32)
    batch_loss = -alpha_sel * focal * log_p * valid_f            # (tile_n, 1)

    o_ref[0, 0] = jnp.sum(batch_loss)


def _pick_tile_n(n, c, itemsize):
    """Rows per tile: whole batch if small, else a VMEM-safe multiple of 8."""
    if n <= 512:
        return int(n)
    # Keep one logits buffer <= ~4 MiB so double buffering (plus targets)
    # stays well under the scoped-VMEM default on v5e/v6e/v7x.
    cap = (4 * 1024 * 1024) // max(1, c * itemsize)
    cap = min(cap, 512)
    cap = max(8, (cap // 8) * 8)
    return int(cap)


def focal_loss(inputs, targets, alpha=None, gamma=2.0, size_average=True,
               tile_n=None):
    """inputs: (N, C) float logits; targets: (N,) int class ids."""
    n, c = inputs.shape
    if alpha is None:
        # Matches FocalLoss.__init__: alpha = ones(class_num, 1)
        alpha = jnp.ones((c, 1), dtype=jnp.float32)
    alpha_row = jnp.asarray(alpha).reshape(1, c).astype(jnp.float32)
    targets_2d = targets.reshape(n, 1).astype(jnp.int32)

    if tile_n is None:
        tile_n = _pick_tile_n(n, c, jnp.dtype(inputs.dtype).itemsize)
    num_tiles = pl.cdiv(n, tile_n)

    kernel = functools.partial(
        _focal_loss_kernel, gamma=float(gamma), n_rows=int(n), tile_n=int(tile_n)
    )

    partials = pl.pallas_call(
        kernel,
        out_shape=jax.ShapeDtypeStruct((num_tiles, 1), jnp.float32),
        grid=(num_tiles,),
        in_specs=[
            pl.BlockSpec((tile_n, c), lambda i: (i, 0)),   # logits tile
            pl.BlockSpec((tile_n, 1), lambda i: (i, 0)),   # targets tile
            pl.BlockSpec((1, c), lambda i: (0, 0)),        # alpha (resident)
        ],
        out_specs=pl.BlockSpec((1, 1), lambda i: (i, 0),
                               memory_space=pltpu.SMEM),
        compiler_params=pltpu.CompilerParams(
            dimension_semantics=("parallel",)),
    )(inputs, targets_2d, alpha_row)

    total = jnp.sum(partials)
    if size_average:
        return total / jnp.float32(n)
    return total


def _focal_loss_ref(inputs, targets, alpha, gamma, size_average):
    # Pure-JAX reference for a sanity check (mirrors the PyTorch module).
    p = jax.nn.softmax(inputs.astype(jnp.float32), axis=1)
    probs = jnp.take_along_axis(p, targets.reshape(-1, 1), axis=1)
    probs = jnp.clip(probs, 0.0001, 1.0)
    a = alpha.reshape(-1)[targets].reshape(-1, 1)
    batch_loss = -a * jnp.power(1.0 - probs, gamma) * jnp.log(probs)
    return jnp.mean(batch_loss) if size_average else jnp.sum(batch_loss)


if __name__ == "__main__":
    key = jax.random.PRNGKey(0)
    k_x, k_t, k_x2, k_t2 = jax.random.split(key, 4)

    # Test 1: small shape consistent with the module (single tile).
    N, C = 8, 16
    x = jax.random.normal(k_x, (N, C), dtype=jnp.float32)
    targets = jax.random.randint(k_t, (N,), 0, C, dtype=jnp.int32)
    alpha = jnp.ones((C, 1), dtype=jnp.float32)

    loss = focal_loss(x, targets, alpha=alpha, gamma=2.0, size_average=True)
    loss = jax.block_until_ready(loss)
    ref = _focal_loss_ref(x, targets, alpha, 2.0, True)
    assert jnp.allclose(loss, ref, rtol=1e-5, atol=1e-5), (loss, ref)

    # Test 2: exercise the batch grid + partial-last-tile masking
    # (N=20 rows, forced tile of 8 rows -> 3 tiles, last one partial).
    N2, C2 = 20, 16
    x2 = jax.random.normal(k_x2, (N2, C2), dtype=jnp.float32)
    t2 = jax.random.randint(k_t2, (N2,), 0, C2, dtype=jnp.int32)
    alpha2 = jnp.ones((C2, 1), dtype=jnp.float32)

    loss2 = focal_loss(x2, t2, alpha=alpha2, gamma=2.0, size_average=False,
                       tile_n=8)
    loss2 = jax.block_until_ready(loss2)
    ref2 = _focal_loss_ref(x2, t2, alpha2, 2.0, False)
    assert jnp.allclose(loss2, ref2, rtol=1e-5, atol=1e-5), (loss2, ref2)

    print("KERNEL_OK")
</pallas_src>

<mosaic_0001>
module attributes {stable_mosaic.version = 11 : i64} {
  func.func @_focal_loss_kernel(%arg0: i32, %arg1: memref<8x16xf32, #tpu.memory_space<vmem>>, %arg2: memref<8x1xi32, #tpu.memory_space<vmem>>, %arg3: memref<1x16xf32, #tpu.memory_space<vmem>>, %arg4: memref<1x1xf32, #tpu.memory_space<smem>>) attributes {dimension_semantics = [#tpu.dimension_semantics<parallel>], iteration_bounds = array<i64: 1>, scalar_prefetch = 0 : i64, scratch_operands = 0 : i64, tpu.core_type = #tpu.core_type<tc>, window_params = [{transform_indices = @transform_0, window_bounds = array<i64: 8, 16>}, {transform_indices = @transform_1, window_bounds = array<i64: 8, 1>}, {pipeline_mode = #tpu.pipeline_mode<synchronous>, transform_indices = @transform_2, window_bounds = array<i64: 1, 16>}, {transform_indices = @transform_3, window_bounds = array<i64: 1, 1>}]} {
    %c0 = arith.constant 0 : index
    %c0_0 = arith.constant 0 : index
    %0 = vector.load %arg1[%c0, %c0_0] : memref<8x16xf32, #tpu.memory_space<vmem>>, vector<8x16xf32>
    %c0_1 = arith.constant 0 : index
    %c0_2 = arith.constant 0 : index
    %1 = vector.load %arg2[%c0_1, %c0_2] : memref<8x1xi32, #tpu.memory_space<vmem>>, vector<8x1xi32>
    %c0_3 = arith.constant 0 : index
    %c0_4 = arith.constant 0 : index
    %2 = vector.load %arg3[%c0_3, %c0_4] : memref<1x16xf32, #tpu.memory_space<vmem>>, vector<1x16xf32>
    %3 = tpu.iota {dimensions = array<i32: 0>} : vector<8x1xi32>
    %c8_i32 = arith.constant 8 : i32
    %4 = arith.muli %arg0, %c8_i32 : i32
    %5 = vector.broadcast %4 : i32 to vector<8x1xi32>
    %6 = arith.addi %3, %5 : vector<8x1xi32>
    %c8_i32_5 = arith.constant 8 : i32
    %7 = vector.broadcast %c8_i32_5 : i32 to vector<8x1xi32>
    %8 = arith.cmpi slt, %6, %7 : vector<8x1xi32>
    %cst = arith.constant 0.000000e+00 : f32
    %9 = vector.shape_cast %8 : vector<8x1xi1> to vector<8x1xi1>
    %10 = vector.broadcast %9 : vector<8x1xi1> to vector<8x16xi1>
    %11 = vector.broadcast %cst : f32 to vector<8x16xf32>
    %12 = arith.select %10, %0, %11 : vector<8x16xi1>, vector<8x16xf32>
    %c0_i32 = arith.constant 0 : i32
    %13 = vector.broadcast %c0_i32 : i32 to vector<8x1xi32>
    %14 = arith.select %8, %1, %13 : vector<8x1xi1>, vector<8x1xi32>
    %15 = tpu.iota {dimensions = array<i32: 1>} : vector<8x16xi32>
    %16 = vector.broadcast %14 : vector<8x1xi32> to vector<8x16xi32>
    %17 = arith.cmpi eq, %15, %16 : vector<8x16xi32>
    %18 = arith.extui %17 : vector<8x16xi1> to vector<8x16xi32>
    %19 = arith.sitofp %18 : vector<8x16xi32> to vector<8x16xf32>
    %cst_6 = arith.constant dense<0xFF800000> : vector<8xf32>
    %20 = vector.multi_reduction <maximumf>, %12, %cst_6 [1] : vector<8x16xf32> to vector<8xf32>
    %21 = vector.shape_cast %20 : vector<8xf32> to vector<8x1xf32>
    %22 = vector.broadcast %21 : vector<8x1xf32> to vector<8x16xf32>
    %23 = arith.subf %12, %22 : vector<8x16xf32>
    %24 = math.exp %23 : vector<8x16xf32>
    %cst_7 = arith.constant dense<0.000000e+00> : vector<8xf32>
    %25 = vector.multi_reduction <add>, %24, %cst_7 [1] : vector<8x16xf32> to vector<8xf32>
    %26 = vector.shape_cast %25 : vector<8xf32> to vector<8x1xf32>
    %27 = arith.mulf %12, %19 : vector<8x16xf32>
    %cst_8 = arith.constant dense<0.000000e+00> : vector<8xf32>
    %28 = vector.multi_reduction <add>, %27, %cst_8 [1] : vector<8x16xf32> to vector<8xf32>
    %29 = vector.shape_cast %28 : vector<8xf32> to vector<8x1xf32>
    %30 = arith.subf %29, %21 : vector<8x1xf32>
    %31 = math.exp %30 : vector<8x1xf32>
    %32 = arith.divf %31, %26 : vector<8x1xf32>
    %cst_9 = arith.constant 9.99999974E-5 : f32
    %cst_10 = arith.constant 1.000000e+00 : f32
    %33 = vector.broadcast %cst_9 : f32 to vector<8x1xf32>
    %34 = arith.maximumf %33, %32 : vector<8x1xf32>
    %35 = vector.broadcast %cst_10 : f32 to vector<8x1xf32>
    %36 = arith.minimumf %35, %34 : vector<8x1xf32>
    %37 = math.log %36 : vector<8x1xf32>
    %38 = vector.broadcast %2 : vector<1x16xf32> to vector<8x16xf32>
    %39 = arith.mulf %19, %38 : vector<8x16xf32>
    %cst_11 = arith.constant dense<0.000000e+00> : vector<8xf32>
    %40 = vector.multi_reduction <add>, %39, %cst_11 [1] : vector<8x16xf32> to vector<8xf32>
    %41 = vector.shape_cast %40 : vector<8xf32> to vector<8x1xf32>
    %cst_12 = arith.constant 1.000000e+00 : f32
    %42 = vector.broadcast %cst_12 : f32 to vector<8x1xf32>
    %43 = arith.subf %42, %36 : vector<8x1xf32>
    %44 = arith.mulf %43, %43 : vector<8x1xf32>
    %45 = arith.extui %8 : vector<8x1xi1> to vector<8x1xi32>
    %46 = arith.sitofp %45 : vector<8x1xi32> to vector<8x1xf32>
    %cst_13 = arith.constant 0.000000e+00 : f32
    %47 = vector.broadcast %cst_13 : f32 to vector<8x1xf32>
    %48 = arith.subf %47, %41 : vector<8x1xf32>
    %49 = arith.mulf %48, %44 : vector<8x1xf32>
    %50 = arith.mulf %49, %37 : vector<8x1xf32>
    %51 = arith.mulf %50, %46 : vector<8x1xf32>
    %52 = vector.shape_cast %51 : vector<8x1xf32> to vector<1x8x1xf32>
    %cst_14 = arith.constant dense<0.000000e+00> : vector<1xf32>
    %53 = vector.multi_reduction <add>, %52, %cst_14 [1, 2] : vector<1x8x1xf32> to vector<1xf32>
    %54 = vector.shape_cast %53 : vector<1xf32> to vector<1x1x1xf32>
    %55 = vector.extract %54[0, 0, 0] : f32 from vector<1x1x1xf32>
    %c0_15 = arith.constant 0 : index
    %c0_16 = arith.constant 0 : index
    %56 = memref.load %arg4[%c0_15, %c0_16] : memref<1x1xf32, #tpu.memory_space<smem>>
    memref.store %55, %arg4[%c0_15, %c0_16] : memref<1x1xf32, #tpu.memory_space<smem>>
    return
  }
  func.func @transform_0(%arg0: i32) -> (i32, i32) {
    %c0_i32 = arith.constant 0 : i32
    %c0_i32_0 = arith.constant 0 : i32
    return %arg0, %c0_i32 : i32, i32
  }
  func.func @transform_1(%arg0: i32) -> (i32, i32) {
    %c0_i32 = arith.constant 0 : i32
    %c0_i32_0 = arith.constant 0 : i32
    return %arg0, %c0_i32 : i32, i32
  }
  func.func @transform_2(%arg0: i32) -> (i32, i32) {
    %c0_i32 = arith.constant 0 : i32
    %c0_i32_0 = arith.constant 0 : i32
    %c0_i32_1 = arith.constant 0 : i32
    return %c0_i32, %c0_i32_0 : i32, i32
  }
  func.func @transform_3(%arg0: i32) -> (i32, i32) {
    %c0_i32 = arith.constant 0 : i32
    %c0_i32_0 = arith.constant 0 : i32
    return %arg0, %c0_i32 : i32, i32
  }
}

</mosaic_0001>

<bundles_post_ra>
// kernel: tpu_custom_call.1
= control target key start
LH: loop header
LB: loop body
LE: loop exit
PB: predicated region body
PF: predicated region fallthrough
CT: control target
= control target key end

     0   :  { %vm36_vm0 = vcmask 130048   ;;  %s167_s0 = inlined_call_operand.vmem [shape: f32[8,16], index: 0, kind: input, shape index: {}]   ;;  %s168_s1 = inlined_call_operand.vmem [shape: s32[8,1], index: 1, kind: input, shape index: {}]   ;;  %s169_s2 = inlined_call_operand.vmem [shape: f32[1,16], index: 2, kind: input, shape index: {}]   ;;  %s170_s3 = inlined_call_operand.hbm [shape: f32[1,1], index: 3, kind: output, shape index: {}]  }
   0x1   :  { %v15_v0 = vld [vmem:[%s167_s0] sm:$0xff] }
   0x2   :  { %8 = vsyncpa [#allocation3], 0  ;;  %v37_v1 = vsel %vm36_vm0, %v15_v0, -inf  ;;  %v128_v2 = vmov 0   ;;  %v16_v3 = vld [vmem:[%s168_s1] sm:$0xff]  ;;  %v28_v6 = vlaneseq  ;;  %v129_v10 = vmov 0.0  }
   0x3   :  { %109 = vset.pattern.permute.xlu0 %v128_v2  ;;  %v103_v14 = vld [vmem:[%s169_s2] ss:$0 sm:$0xff]  ;;  %vm76_vm2 = vcmask 7168   ;;  %s130_s2 = smov [#allocation2]  }
   0x4   :  { %38 = vmax.xlane.f32.xlu0 %v37_v1  ;;  %v29_v8 = vand.u32 127, %v28_v6 }
  0x1a   :  { %31 = vperm.xlu0 %109, %v16_v3  }
  0x8d   :  { %v39_v4 = vpop.xlane.xlu0 %38 }
  0x8e   :  { %v40_v5 = vsub.f32 %v15_v0, %v39_v4 }
  0x90   :  { %v41_v7 = vmul.f32 1.442695, %v40_v5 }
  0x92   :  { %110 = vpow2.f32 %v41_v7 }
  0x95   :  { %v32_v9 = vpop.permute.xlu0 %31 }
  0x96   :  { %vm33_vm1 = vcmp.eq.s32.totalorder %v29_v8, %v32_v9 }
  0x97   :  { %v102_v11 = vsel %vm33_vm1, 1.0, %v129_v10 }
  0x98   :  { %v46_v12 = vmul.f32 %v102_v11, %v15_v0  ;;  %v65_v17 = vmul.f32 %v103_v14, %v102_v11 }
  0x9a   :  { %v47_v13 = vsel %vm36_vm0, %v46_v12, 0.0  ;;  %v66_v18 = vsel %vm36_vm0, %v65_v17, 0.0 }
  0x9b   :  { %48 = vadd.xlane.f32.xlu1 %v47_v13 }
  0x9f   :  { %v111_v15 = vpop.eup %110 }
  0xa0   :  { %v43_v16 = vsel %vm36_vm0, %v111_v15, 0.0 }
  0xa1   :  { %44 = vadd.xlane.f32.xlu1 %v43_v16 }
  0xa5   :  { %67 = vadd.xlane.f32.xlu1 %v66_v18 }
 0x124   :  { %v49_v19 = vpop.xlane.xlu1 %48 }
 0x125   :  { %v50_v20 = vsub.f32 %v49_v19, %v39_v4 }
 0x127   :  { %v51_v21 = vmul.f32 1.442695, %v50_v20 }
 0x129   :  { %112 = vpow2.f32 %v51_v21 }
 0x12a   :  { %v45_v22 = vpop.xlane.xlu1 %44 }
 0x12b   :  { %114 = vrcp.f32 %v45_v22 }
 0x12e   :  { %v68_v29 = vpop.xlane.xlu1 %67 }
 0x12f   :  { %v72_v31 = vsub.f32 0.0, %v68_v29 }
 0x136   :  { %v113_v23 = vpop.eup %112 }
 0x138   :  { %v115_v24 = vpop.eup %114 }
 0x139   :  { %v54_v25 = vmul.f32 %v115_v24, %v113_v23 }
 0x13b   :  { %v55_v26 = vmax.f32 %v54_v25, 0.0001 }
 0x13d   :  { %v56_v27 = vmin.f32 %v55_v26, 1.0 }
 0x13f   :  { %116 = vlog2.f32 %v56_v27  ;;  %v69_v28 = vsub.f32 1.0, %v56_v27 }
 0x141   :  { %v70_v30 = vmul.f32 %v69_v28, %v69_v28 }
 0x143   :  { %v73_v33 = vmul.f32 %v72_v31, %v70_v30 }
 0x14c   :  { %v117_v32 = vpop.eup %116 }
 0x14d   :  { %v58_v34 = vmul.f32 0.6931472, %v117_v32 }
 0x14f   :  { %v74_v35 = vmul.f32 %v73_v33, %v58_v34 }
 0x151   :  { %v77_v36 = vsel %vm76_vm2, %v74_v35, 0.0 }
 0x152   :  { %78 = vadd.xlane.f32.xlu1 %v77_v36 }
 0x1db   :  { %v79_v37 = vpop.xlane.xlu1 %78 }
 0x1dc   :  { %v80_v38 = vrot.slane %v79_v37, 4 }
 0x1de   :  { %v81_v39 = vadd.f32 %v80_v38, %v79_v37 }
 0x1e0   :  { %v82_v40 = vrot.slane %v81_v39, 2 }
 0x1e2   :  { %v83_v41 = vadd.f32 %v82_v40, %v81_v39 }
 0x1e4   :  { %v84_v42 = vrot.slane %v83_v41, 1 }
 0x1e6   :  { %v85_v43 = vadd.f32 %v84_v42, %v83_v41 }
 0x1e8   :  { %104 = vpush %v85_v43 }
 0x219   :  { %s105_s1 = spop %104 }
 0x21a   :  { %88 = sst [smem:[#allocation2]] %s105_s1 }
 0x21b   :  { %96 = dma.smem_to_hbm %s130_s2, 16, %s170_s3, [#allocation3]  }
 0x21c   :  { %126 = dma.done.wait [#allocation3], 16  }
 0x21d   :  { %127 = vsyncadd [#allocation3], 4294967280 }
 0x21e   :  { %100 = sfence }
 0x21f   :  { %101 = vsyncpa [#allocation3], 1 }

</bundles_post_ra>
